<compile_context>
chip_gen: v7x
topology: tpu7x:2x2x1
jax: 0.10.0
libtpu: 0.0.40
codegen_flags: <defaults>
</compile_context>

<pallas_src>
import functools

import jax
import jax.numpy as jnp
from jax.experimental import pallas as pl
from jax.experimental.pallas import tpu as pltpu


def _round_up(x, m):
    return ((x + m - 1) // m) * m


def dqn_kernel(x_ref, w_ref, b_ref, o_ref):
    """Fused fc1->ReLU->fc2->ReLU->fc3 on one (TB, F) batch tile.

    x_ref: (TB, F)   bf16  zero-padded states
    w_ref: (3F, F)   bf16  rows [0:F)=W1p, [F:2F)=W2p, [2F:3F)=W3p (zero-padded)
    b_ref: (8, F)    f32   row 0=b1p, row 1=b2p, row 2=b3p, rest zero
    o_ref: (TB, F)   f32   padded Q-values (real actions in the first columns)
    """
    F = x_ref.shape[1]
    x = x_ref[...]                                            # (TB, F) bf16

    h1 = jnp.dot(x, w_ref[0:F, :], preferred_element_type=jnp.float32)
    h1 = jnp.maximum(h1 + b_ref[0:1, :], 0.0)                 # relu(fc1(state))

    h2 = jnp.dot(h1.astype(jnp.bfloat16), w_ref[F:2 * F, :],
                 preferred_element_type=jnp.float32)
    h2 = jnp.maximum(h2 + b_ref[1:2, :], 0.0)                 # relu(fc2(x))

    o = jnp.dot(h2.astype(jnp.bfloat16), w_ref[2 * F:3 * F, :],
                preferred_element_type=jnp.float32)
    o_ref[...] = o + b_ref[2:3, :]                            # fc3(x), no activation


@functools.partial(jax.jit, static_argnames=("block_b",))
def dqn_forward(state, w1, b1, w2, b2, w3, b3, block_b=256):
    """Pallas forward pass. Weights are (in, out) (transposed vs. torch)."""
    B, D = state.shape
    H1, H2, A = w1.shape[1], w2.shape[1], w3.shape[1]

    # Common lane-dense feature width (128 for the 16/64/32/4 DQN shapes).
    F = _round_up(max(D, H1, H2, A), 128)

    # Batch tile: multiple of 8 sublanes, capped at block_b rows.
    TB = min(block_b, _round_up(B, 8))
    Bp = _round_up(B, TB)

    # Zero-padded, lane-dense, bf16 activations (padded columns hit zero weight
    # rows, so they are inert).
    xp = jnp.zeros((Bp, F), jnp.bfloat16).at[:B, :D].set(state.astype(jnp.bfloat16))

    # Pack all weights into ONE bf16 buffer and all biases into ONE f32 buffer
    # -> 2 parameter DMAs per call instead of 6, VMEM-resident across the grid.
    def _pad_w(w):
        return jnp.zeros((F, F), jnp.float32).at[:w.shape[0], :w.shape[1]].set(w)

    wp = jnp.concatenate([_pad_w(w1), _pad_w(w2), _pad_w(w3)],
                         axis=0).astype(jnp.bfloat16)          # (3F, F)
    bp = jnp.zeros((8, F), jnp.float32)
    bp = bp.at[0, :H1].set(b1.reshape(-1))
    bp = bp.at[1, :H2].set(b2.reshape(-1))
    bp = bp.at[2, :A].set(b3.reshape(-1))                      # padded biases = 0

    out_p = pl.pallas_call(
        dqn_kernel,
        out_shape=jax.ShapeDtypeStruct((Bp, F), jnp.float32),
        grid_spec=pltpu.PrefetchScalarGridSpec(
            num_scalar_prefetch=0,
            grid=(Bp // TB,),
            in_specs=[
                pl.BlockSpec((TB, F), lambda i: (i, 0)),        # streamed batch tile
                pl.BlockSpec((3 * F, F), lambda i: (0, 0)),     # resident packed weights
                pl.BlockSpec((8, F), lambda i: (0, 0)),         # resident packed biases
            ],
            out_specs=pl.BlockSpec((TB, F), lambda i: (i, 0)),
        ),
        compiler_params=pltpu.CompilerParams(
            dimension_semantics=("parallel",),                  # v7x: split batch over 2 TCs
        ),
    )(xp, wp, bp)

    return out_p[:B, :A]


def init_linear(key, fan_in, fan_out):
    # Deterministic init mimicking torch.nn.Linear default:
    # U(-1/sqrt(fan_in), 1/sqrt(fan_in)) for both weight and bias.
    kw, kb = jax.random.split(key)
    bound = 1.0 / jnp.sqrt(jnp.float32(fan_in))
    w = jax.random.uniform(kw, (fan_in, fan_out), jnp.float32, -bound, bound)
    b = jax.random.uniform(kb, (fan_out,), jnp.float32, -bound, bound)
    return w, b


if __name__ == "__main__":
    # Shapes consistent with DeepQNetwork(lr, input_dims=[16], fc1_dims=64,
    # fc2_dims=32, n_actions=4) applied to a small batch of states.
    # TODO(synk): optimizer / MSE loss / checkpoint I/O are training-side and
    # not part of the forward pass, so they are not implemented as kernels.
    batch, input_dim, fc1_dims, fc2_dims, n_actions = 8, 16, 64, 32, 4

    key = jax.random.PRNGKey(0)
    kx, k1, k2, k3 = jax.random.split(key, 4)

    state = jax.random.normal(kx, (batch, input_dim), jnp.float32)
    w1, b1 = init_linear(k1, input_dim, fc1_dims)
    w2, b2 = init_linear(k2, fc1_dims, fc2_dims)
    w3, b3 = init_linear(k3, fc2_dims, n_actions)

    actions = jax.block_until_ready(dqn_forward(state, w1, b1, w2, b2, w3, b3))

    # Pure-JAX reference with matching bf16 rounding of matmul operands
    # (kernel accumulates in f32, so only operand quantization differs).
    rt = lambda a: a.astype(jnp.bfloat16).astype(jnp.float32)
    h1 = jnp.maximum(rt(state) @ rt(w1) + b1, 0.0)
    h2 = jnp.maximum(rt(h1) @ rt(w2) + b2, 0.0)
    ref = rt(h2) @ rt(w3) + b3

    assert actions.shape == (batch, n_actions)
    assert jnp.allclose(actions, ref, atol=5e-2, rtol=5e-2), float(
        jnp.max(jnp.abs(actions - ref)))

    print("KERNEL_OK")
</pallas_src>

<mosaic_0001>
module attributes {stable_mosaic.version = 11 : i64} {
  func.func @dqn_kernel(%arg0: i32, %arg1: memref<8x128xbf16, #tpu.memory_space<vmem>>, %arg2: memref<384x128xbf16, #tpu.memory_space<vmem>>, %arg3: memref<8x128xf32, #tpu.memory_space<vmem>>, %arg4: memref<8x128xf32, #tpu.memory_space<vmem>>) attributes {dimension_semantics = [#tpu.dimension_semantics<parallel>], iteration_bounds = array<i64: 1>, scalar_prefetch = 0 : i64, scratch_operands = 0 : i64, tpu.core_type = #tpu.core_type<tc>, window_params = [{transform_indices = @transform_0, window_bounds = array<i64: 8, 128>}, {pipeline_mode = #tpu.pipeline_mode<synchronous>, transform_indices = @transform_1, window_bounds = array<i64: 384, 128>}, {pipeline_mode = #tpu.pipeline_mode<synchronous>, transform_indices = @transform_2, window_bounds = array<i64: 8, 128>}, {transform_indices = @transform_3, window_bounds = array<i64: 8, 128>}]} {
    %c0 = arith.constant 0 : index
    %c0_0 = arith.constant 0 : index
    %0 = vector.load %arg1[%c0, %c0_0] : memref<8x128xbf16, #tpu.memory_space<vmem>>, vector<8x128xbf16>
    %c0_1 = arith.constant 0 : index
    %c0_2 = arith.constant 0 : index
    %1 = vector.load %arg2[%c0_1, %c0_2] : memref<384x128xbf16, #tpu.memory_space<vmem>>, vector<128x128xbf16>
    %cst = arith.constant dense<0.000000e+00> : vector<8x128xf32>
    %2 = tpu.matmul %0, %1, %cst {dimension_numbers = #tpu.dot_dimension_numbers<[1], [0], [0], [1], [0, 0, 1, 1], [], []>} : vector<8x128xbf16>, vector<128x128xbf16>, vector<8x128xf32> -> vector<8x128xf32>
    %c0_3 = arith.constant 0 : index
    %c0_4 = arith.constant 0 : index
    %3 = vector.load %arg3[%c0_3, %c0_4] : memref<8x128xf32, #tpu.memory_space<vmem>>, vector<1x128xf32>
    %4 = vector.broadcast %3 : vector<1x128xf32> to vector<8x128xf32>
    %5 = arith.addf %2, %4 : vector<8x128xf32>
    %cst_5 = arith.constant 0.000000e+00 : f32
    %6 = vector.broadcast %cst_5 : f32 to vector<8x128xf32>
    %7 = arith.maximumf %5, %6 : vector<8x128xf32>
    %8 = arith.truncf %7 : vector<8x128xf32> to vector<8x128xbf16>
    %c128 = arith.constant 128 : index
    %c0_6 = arith.constant 0 : index
    %9 = vector.load %arg2[%c128, %c0_6] : memref<384x128xbf16, #tpu.memory_space<vmem>>, vector<128x128xbf16>
    %cst_7 = arith.constant dense<0.000000e+00> : vector<8x128xf32>
    %10 = tpu.matmul %8, %9, %cst_7 {dimension_numbers = #tpu.dot_dimension_numbers<[1], [0], [0], [1], [0, 0, 1, 1], [], []>} : vector<8x128xbf16>, vector<128x128xbf16>, vector<8x128xf32> -> vector<8x128xf32>
    %c1 = arith.constant 1 : index
    %c0_8 = arith.constant 0 : index
    %11 = vector.load %arg3[%c1, %c0_8] : memref<8x128xf32, #tpu.memory_space<vmem>>, vector<1x128xf32>
    %12 = vector.broadcast %11 : vector<1x128xf32> to vector<8x128xf32>
    %13 = arith.addf %10, %12 : vector<8x128xf32>
    %cst_9 = arith.constant 0.000000e+00 : f32
    %14 = vector.broadcast %cst_9 : f32 to vector<8x128xf32>
    %15 = arith.maximumf %13, %14 : vector<8x128xf32>
    %16 = arith.truncf %15 : vector<8x128xf32> to vector<8x128xbf16>
    %c256 = arith.constant 256 : index
    %c0_10 = arith.constant 0 : index
    %17 = vector.load %arg2[%c256, %c0_10] : memref<384x128xbf16, #tpu.memory_space<vmem>>, vector<128x128xbf16>
    %cst_11 = arith.constant dense<0.000000e+00> : vector<8x128xf32>
    %18 = tpu.matmul %16, %17, %cst_11 {dimension_numbers = #tpu.dot_dimension_numbers<[1], [0], [0], [1], [0, 0, 1, 1], [], []>} : vector<8x128xbf16>, vector<128x128xbf16>, vector<8x128xf32> -> vector<8x128xf32>
    %c2 = arith.constant 2 : index
    %c0_12 = arith.constant 0 : index
    %19 = vector.load %arg3[%c2, %c0_12] : memref<8x128xf32, #tpu.memory_space<vmem>>, vector<1x128xf32>
    %20 = vector.broadcast %19 : vector<1x128xf32> to vector<8x128xf32>
    %21 = arith.addf %18, %20 : vector<8x128xf32>
    %c0_13 = arith.constant 0 : index
    %c0_14 = arith.constant 0 : index
    %22 = vector.load %arg4[%c0_13, %c0_14] : memref<8x128xf32, #tpu.memory_space<vmem>>, vector<8x128xf32>
    tpu.vector_store %arg4[%c0_13, %c0_14], %21 {strides = array<i32>} : memref<8x128xf32, #tpu.memory_space<vmem>>, vector<8x128xf32>,
    return
  }
  func.func @transform_0(%arg0: i32) -> (i32, i32) {
    %c0_i32 = arith.constant 0 : i32
    %c0_i32_0 = arith.constant 0 : i32
    return %arg0, %c0_i32 : i32, i32
  }
  func.func @transform_1(%arg0: i32) -> (i32, i32) {
    %c0_i32 = arith.constant 0 : i32
    %c0_i32_0 = arith.constant 0 : i32
    %c0_i32_1 = arith.constant 0 : i32
    return %c0_i32, %c0_i32_0 : i32, i32
  }
  func.func @transform_2(%arg0: i32) -> (i32, i32) {
    %c0_i32 = arith.constant 0 : i32
    %c0_i32_0 = arith.constant 0 : i32
    %c0_i32_1 = arith.constant 0 : i32
    return %c0_i32, %c0_i32_0 : i32, i32
  }
  func.func @transform_3(%arg0: i32) -> (i32, i32) {
    %c0_i32 = arith.constant 0 : i32
    %c0_i32_0 = arith.constant 0 : i32
    return %arg0, %c0_i32 : i32, i32
  }
}

</mosaic_0001>

<bundles_post_ra>
// kernel: dqn_forward.1
= control target key start
LH: loop header
LB: loop body
LE: loop exit
PB: predicated region body
PF: predicated region fallthrough
CT: control target
= control target key end

     0   :  { %v492_v0 = vmov 0.0   ;;  %vm493_vm0 = vmmov 0   ;;  %s631_s1 = inlined_call_operand.vmem [shape: bf16[384,128], index: 1, kind: input, shape index: {}]   ;;  %s632_s0 = inlined_call_operand.vmem [shape: bf16[8,128], index: 0, kind: input, shape index: {}]   ;;  %s633_s2 = inlined_call_operand.vmem [shape: f32[8,128], index: 2, kind: input, shape index: {}]   ;;  %s634_s3 = inlined_call_operand.vmem [shape: f32[8,128], index: 3, kind: output, shape index: {}]  }
   0x1   :  { %406 = vmatprep.subr.bf16.mxu0 %v492_v0  ;;  %v468_v1 = vld [vmem:[%s631_s1] sm:$0xff]   ;;  %422 = vmatprep.mubr.msk.bf16.mxu0 %vm493_vm0, %v492_v0  ;;  %v469_v2 = vld [vmem:[%s631_s1 + $0x8] sm:$0xff]   ;;  %v470_v3 = vld [vmem:[%s631_s1 + $0x10] sm:$0xff]  }
   0x2   :  { %426 = vmatprep.subr.bf16.mxu1 %v492_v0  ;;  %442 = vmatprep.mubr.msk.bf16.mxu1 %vm493_vm0, %v492_v0  ;;  %v476_v4 = vld [vmem:[%s631_s1 + $0x40] sm:$0xff]   ;;  %v471_v5 = vld [vmem:[%s631_s1 + $0x18] sm:$0xff]   ;;  %v477_v6 = vld [vmem:[%s631_s1 + $0x48] sm:$0xff]  }
   0x3   :  { %407 = vmatpush3.bf16.msra.mxu0 %v468_v1  ;;  %427 = vmatpush3.bf16.msra.mxu1 %v476_v4  ;;  %v472_v7 = vld [vmem:[%s631_s1 + $0x20] sm:$0xff]   ;;  %v478_v8 = vld [vmem:[%s631_s1 + $0x50] sm:$0xff]   ;;  %v473_v9 = vld [vmem:[%s631_s1 + $0x28] sm:$0xff]  }
   0x4   :  { %408 = vmatprep.subr.bf16.mxu0 %v492_v0  ;;  %428 = vmatprep.subr.bf16.mxu1 %v492_v0  ;;  %v479_v10 = vld [vmem:[%s631_s1 + $0x58] sm:$0xff]   ;;  %v474_v11 = vld [vmem:[%s631_s1 + $0x30] sm:$0xff]   ;;  %v480_v12 = vld [vmem:[%s631_s1 + $0x60] sm:$0xff]  }
   0x5   :  { %v475_v13 = vld [vmem:[%s631_s1 + $0x38] sm:$0xff]   ;;  %v481_v14 = vld [vmem:[%s631_s1 + $0x68] sm:$0xff]   ;;  %v15_v15 = vld [vmem:[%s632_s0] sm:$0xf] }
   0x6   :  { %v482_v16 = vld [vmem:[%s631_s1 + $0x70] sm:$0xff]   ;;  %v483_v17 = vld [vmem:[%s631_s1 + $0x78] sm:$0xff]   ;;  %v484_v18 = vld [vmem:[%s631_s1 + $0x80] sm:$0xff]  }
   0x7   :  { %409 = vmatpush3.bf16.msra.mxu0 %v469_v2  ;;  %429 = vmatpush3.bf16.msra.mxu1 %v477_v6  ;;  %v485_v19 = vld [vmem:[%s631_s1 + $0x88] sm:$0xff]   ;;  %v486_v20 = vld [vmem:[%s631_s1 + $0x90] sm:$0xff]   ;;  %v487_v21 = vld [vmem:[%s631_s1 + $0x98] sm:$0xff]  }
   0x8   :  { %410 = vmatprep.subr.bf16.mxu0 %v492_v0  ;;  %430 = vmatprep.subr.bf16.mxu1 %v492_v0  ;;  %v488_v22 = vld [vmem:[%s631_s1 + $0xa0] sm:$0xff]   ;;  %v489_v23 = vld [vmem:[%s631_s1 + $0xa8] sm:$0xff]   ;;  %v490_v32 = vld [vmem:[%s631_s1 + $0xb0] sm:$0xff]  }
   0x9   :  { %v352_v24 = vld [vmem:[%s633_s2] ss:$0 sm:$0xff]  ;;  %v491_v33 = vld [vmem:[%s631_s1 + $0xb8] sm:$0xff]   ;;  %v361_v34 = vld [vmem:[%s633_s2 + $0x1] ss:$0 sm:$0xff] }
   0xa   :  { %v370_v42 = vld [vmem:[%s633_s2 + $0x2] ss:$0 sm:$0xff] }
   0xb   :  { %411 = vmatpush3.bf16.msra.mxu0 %v470_v3  ;;  %431 = vmatpush3.bf16.msra.mxu1 %v478_v8 }
   0xc   :  { %412 = vmatprep.subr.bf16.mxu0 %v492_v0  ;;  %432 = vmatprep.subr.bf16.mxu1 %v492_v0 }
   0xf   :  { %413 = vmatpush3.bf16.msra.mxu0 %v471_v5  ;;  %433 = vmatpush3.bf16.msra.mxu1 %v479_v10 }
  0x10   :  { %414 = vmatprep.subr.bf16.mxu0 %v492_v0  ;;  %434 = vmatprep.subr.bf16.mxu1 %v492_v0 }
  0x13   :  { %415 = vmatpush3.bf16.msra.mxu0 %v472_v7  ;;  %435 = vmatpush3.bf16.msra.mxu1 %v480_v12 }
  0x14   :  { %416 = vmatprep.subr.bf16.mxu0 %v492_v0  ;;  %436 = vmatprep.subr.bf16.mxu1 %v492_v0 }
  0x17   :  { %417 = vmatpush3.bf16.msra.mxu0 %v473_v9  ;;  %437 = vmatpush3.bf16.msra.mxu1 %v481_v14 }
  0x18   :  { %418 = vmatprep.subr.bf16.mxu0 %v492_v0  ;;  %438 = vmatprep.subr.bf16.mxu1 %v492_v0 }
  0x1b   :  { %419 = vmatpush3.bf16.msra.mxu0 %v474_v11  ;;  %439 = vmatpush3.bf16.msra.mxu1 %v482_v16 }
  0x1c   :  { %420 = vmatprep.subr.bf16.mxu0 %v492_v0  ;;  %440 = vmatprep.subr.bf16.mxu1 %v492_v0 }
  0x1f   :  { %421 = vmatpush3.bf16.msra.mxu0 %v475_v13  ;;  %441 = vmatpush3.bf16.msra.mxu1 %v483_v17 }
  0x20   :  { %446 = vmatprep.subr.bf16.mxu0 %v492_v0 }
  0x22   :  { %423 = vmatmul.mubr.bf16.vlgmr.msra.gmra.mrb[0].mxu0 %v15_v15 }
  0x23   :  { %462 = vmatprep.mubr.msk.bf16.mxu0 %vm493_vm0, %v492_v0  ;;  %447 = vmatpush3.bf16.msra.mxu0 %v484_v18 }
  0x24   :  { %448 = vmatprep.subr.bf16.mxu0 %v492_v0 }
  0x27   :  { %449 = vmatpush3.bf16.msra.mxu0 %v485_v19 }
  0x28   :  { %450 = vmatprep.subr.bf16.mxu0 %v492_v0 }
  0x2b   :  { %451 = vmatpush3.bf16.msra.mxu0 %v486_v20 }
  0x2c   :  { %452 = vmatprep.subr.bf16.mxu0 %v492_v0 }
  0x2f   :  { %453 = vmatpush3.bf16.msra.mxu0 %v487_v21 }
  0x30   :  { %454 = vmatprep.subr.bf16.mxu0 %v492_v0 }
  0x33   :  { %455 = vmatpush3.bf16.msra.mxu0 %v488_v22 }
  0x34   :  { %456 = vmatprep.subr.bf16.mxu0 %v492_v0 }
  0x37   :  { %457 = vmatpush3.bf16.msra.mxu0 %v489_v23 }
  0x38   :  { %458 = vmatprep.subr.bf16.mxu0 %v492_v0 }
  0x3b   :  { %459 = vmatpush3.bf16.msra.mxu0 %v490_v32 }
  0x3c   :  { %460 = vmatprep.subr.bf16.mxu0 %v492_v0 }
  0x3f   :  { %461 = vmatpush3.bf16.msra.mxu0 %v491_v33 }
  0xf5   :  { %v119_v25 = vpop.f32.mrb[0].mxu0 }
  0xf6   :  { %v120_v26 = vadd.f32 %v352_v24, %v119_v25  ;;  %v424_v27 = vpop.f32.mrb[1].mxu0 }
  0xf7   :  { %v122_v28 = vpop.f32.mrb[2].mxu0 }
  0xf8   :  { %v125_v29 = vmax.f32 %v120_v26, 0.0  ;;  %v425_v30 = vpop.f32.mrb[3].mxu0 }
  0xfa   :  { %v126_v31 = vpack.c.bf16 %v125_v29, %v125_v29 }
  0xfc   :  { %443 = vmatmul.mubr.bf16.vlgmr.msra.gmra.mrb[0].mxu1 %v126_v31 }
 0x1cf   :  { %v230_v35 = vpop.f32.mrb[0].mxu1 }
 0x1d0   :  { %v231_v36 = vadd.f32 %v361_v34, %v230_v35  ;;  %v444_v37 = vpop.f32.mrb[1].mxu1 }
 0x1d1   :  { %v233_v38 = vpop.f32.mrb[2].mxu1 }
 0x1d2   :  { %v236_v39 = vmax.f32 %v231_v36, 0.0  ;;  %v445_v40 = vpop.f32.mrb[3].mxu1 }
 0x1d4   :  { %v237_v41 = vpack.c.bf16 %v236_v39, %v236_v39 }
 0x1d6   :  { %463 = vmatmul.mubr.bf16.vlgmr.msra.gmra.mrb[4].mxu0 %v237_v41 }
 0x2a9   :  { %v341_v43 = vpop.f32.mrb[4].mxu0 }
 0x2aa   :  { %v342_v44 = vadd.f32 %v370_v42, %v341_v43  ;;  %v464_v45 = vpop.f32.mrb[5].mxu0 }
 0x2ab   :  { %v344_v46 = vpop.f32.mrb[6].mxu0 }
 0x2ac   :  { %347 = vst [vmem:[%s634_s3] sm:$0xff] %v342_v44  ;;  %v465_v47 = vpop.f32.mrb[7].mxu0 }

</bundles_post_ra>
